<compile_context>
chip_gen: v7x
topology: tpu7x:2x2x1
jax: 0.10.0
libtpu: 0.0.40
codegen_flags: <defaults>
</compile_context>

<pallas_src>
import functools

import jax
import jax.numpy as jnp
import numpy as np
from jax.experimental import pallas as pl
from jax.experimental.pallas import tpu as pltpu


def _round_up(x, m):
    return ((x + m - 1) // m) * m


def trump_rnn_kernel(x_ref, wh_ref, bs_ref, wx_ref, wo_ref, bo_ref,
                     out_ref, *, B, B_pad, T, d_out):
    """Whole sequence in one invocation.

    x_ref  : (T*B_pad, d_in)     time-major flattened input (row t*B_pad + b)
    wh_ref : (d_h, d_h)          Wh^T
    bs_ref : (1, d_h)            bh + bx (folded)
    wx_ref : (d_in, d_h)         Wx^T
    wo_ref : (d_h, d_out)        Wo^T
    bo_ref : (1, d_out)
    out_ref: (B, (T+1)*d_out)    final layout, written with one dense store
    """
    # ---- Hoist all weight / bias loads once (no per-iteration ref derefs) --
    wh = wh_ref[...]
    wx = wx_ref[...]
    wo = wo_ref[...]
    bs = bs_ref[...]
    bo = bo_ref[...]

    # ---- Phase 1: batched input projection (one large MXU matmul) ----------
    # S2 = X @ Wx^T + (bh + bx), all T*B_pad rows at once; lives in vregs.
    s2 = jnp.dot(x_ref[...], wx, preferred_element_type=jnp.float32) + bs

    # ---- Phase 2: sequential recurrence, output projection fused per step --
    # Only h @ Wh is truly serial.  Pre-activations never touch VMEM.
    outs = [jnp.zeros((B_pad, d_out), jnp.float32)]   # torch's zero o_0 block

    # Peel t == 0: h0 == 0, so the Wh matmul contributes nothing.
    s_t = s2[0:B_pad, :]
    outs.append(jnp.dot(s_t, wo, preferred_element_type=jnp.float32) + bo)
    h = jnp.tanh(s_t)

    for t in range(1, T):   # static, fully unrolled (T is small); all slices static
        s_t = (s2[t * B_pad:(t + 1) * B_pad, :]
               + jnp.dot(h, wh, preferred_element_type=jnp.float32))
        outs.append(jnp.dot(s_t, wo, preferred_element_type=jnp.float32) + bo)
        h = jnp.tanh(s_t)

    # ---- Phase 3: assemble final row layout in vregs, single dense store ---
    o_cat = jnp.concatenate(outs, axis=1)             # (B_pad, (T+1)*d_out)
    out_ref[...] = o_cat[0:B, :]


def trump_encodeur_forward(seq_btd, wh_T, bh, wx_T, bx, wo_T, bo):
    """seq_btd: (B, T, d_in_x). Weights are pre-transposed (in_dim, out_dim)."""
    B, T, d_in_x = seq_btd.shape
    d_out = wo_T.shape[1]
    B_pad = max(8, _round_up(B, 8))        # fill sublane groups for the MXU

    x = seq_btd.astype(jnp.float32)
    if B_pad != B:
        x = jnp.pad(x, ((0, B_pad - B), (0, 0), (0, 0)))
    # Time-major flatten so per-step slices are whole, aligned sublane groups.
    x_tm = jnp.transpose(x, (1, 0, 2)).reshape(T * B_pad, d_in_x)

    b_s = (bh + bx).astype(jnp.float32)    # fold the two hidden-state biases

    kernel = functools.partial(trump_rnn_kernel,
                               B=B, B_pad=B_pad, T=T, d_out=d_out)

    out = pl.pallas_call(
        kernel,
        out_shape=jax.ShapeDtypeStruct((B, (T + 1) * d_out), jnp.float32),
        # Tiny footprint (<100 KiB) at these shapes; set an explicit VMEM
        # ceiling so the design stays honest if shapes are scaled up later.
        compiler_params=pltpu.CompilerParams(vmem_limit_bytes=16 << 20),
    )(x_tm,
      wh_T.astype(jnp.float32), b_s,
      wx_T.astype(jnp.float32),
      wo_T.astype(jnp.float32), bo.astype(jnp.float32))
    return out


def reference_forward(seq_btd, wh_T, bh, wx_T, bx, wo_T, bo):
    """Pure-JAX reference (mirrors the PyTorch loop)."""
    B, T, _ = seq_btd.shape
    d_h = wh_T.shape[0]
    d_out = wo_T.shape[1]

    def step(h, x):
        s = h @ wh_T + bh[0] + x @ wx_T + bx[0]
        h_new = jnp.tanh(s)
        o_t = s @ wo_T + bo[0]
        return h_new, o_t

    h0 = jnp.zeros((B, d_h), jnp.float32)
    _, o_tbd = jax.lax.scan(step, h0, jnp.transpose(seq_btd, (1, 0, 2)))
    o_btd = jnp.transpose(o_tbd, (1, 0, 2))
    o = jnp.concatenate([jnp.zeros((B, 1, d_out), jnp.float32), o_btd], axis=1)
    return o.reshape(B, (T + 1) * d_out)


if __name__ == "__main__":
    # Small shapes implied by the module: batch, seq length, d_in_x, d_h, d_out.
    B, T, d_in_x, d_h, d_out = 2, 8, 8, 32, 16

    key = jax.random.PRNGKey(0)
    k_seq, k_wh, k_bh, k_wx, k_bx, k_wo, k_bo = jax.random.split(key, 7)

    seq = jax.random.normal(k_seq, (B, T, d_in_x), jnp.float32)

    # Deterministic "Linear" params; stored pre-transposed as (in_dim, out_dim).
    wh_T = 0.1 * jax.random.normal(k_wh, (d_h, d_h), jnp.float32)
    bh = 0.1 * jax.random.normal(k_bh, (1, d_h), jnp.float32)
    wx_T = 0.1 * jax.random.normal(k_wx, (d_in_x, d_h), jnp.float32)
    bx = 0.1 * jax.random.normal(k_bx, (1, d_h), jnp.float32)
    wo_T = 0.1 * jax.random.normal(k_wo, (d_h, d_out), jnp.float32)
    bo = 0.1 * jax.random.normal(k_bo, (1, d_out), jnp.float32)

    out = trump_encodeur_forward(seq, wh_T, bh, wx_T, bx, wo_T, bo)
    out = jax.block_until_ready(out)

    ref = reference_forward(seq, wh_T, bh, wx_T, bx, wo_T, bo)
    np.testing.assert_allclose(np.asarray(out), np.asarray(ref),
                               rtol=1e-5, atol=1e-5)
    assert out.shape == (B, (T + 1) * d_out)

    print("KERNEL_OK")
</pallas_src>

<mosaic_0001>
module attributes {stable_mosaic.version = 11 : i64} {
  func.func @trump_rnn_kernel(%arg0: memref<64x8xf32, #tpu.memory_space<vmem>>, %arg1: memref<32x32xf32, #tpu.memory_space<vmem>>, %arg2: memref<1x32xf32, #tpu.memory_space<vmem>>, %arg3: memref<8x32xf32, #tpu.memory_space<vmem>>, %arg4: memref<32x16xf32, #tpu.memory_space<vmem>>, %arg5: memref<1x16xf32, #tpu.memory_space<vmem>>, %arg6: memref<2x144xf32, #tpu.memory_space<vmem>>) attributes {dimension_semantics = [], scalar_prefetch = 0 : i64, scratch_operands = 0 : i64, tpu.core_type = #tpu.core_type<tc>} {
    %c0 = arith.constant 0 : index
    %c0_0 = arith.constant 0 : index
    %0 = vector.load %arg1[%c0, %c0_0] : memref<32x32xf32, #tpu.memory_space<vmem>>, vector<32x32xf32>
    %c0_1 = arith.constant 0 : index
    %c0_2 = arith.constant 0 : index
    %1 = vector.load %arg3[%c0_1, %c0_2] : memref<8x32xf32, #tpu.memory_space<vmem>>, vector<8x32xf32>
    %c0_3 = arith.constant 0 : index
    %c0_4 = arith.constant 0 : index
    %2 = vector.load %arg4[%c0_3, %c0_4] : memref<32x16xf32, #tpu.memory_space<vmem>>, vector<32x16xf32>
    %c0_5 = arith.constant 0 : index
    %c0_6 = arith.constant 0 : index
    %3 = vector.load %arg2[%c0_5, %c0_6] : memref<1x32xf32, #tpu.memory_space<vmem>>, vector<1x32xf32>
    %c0_7 = arith.constant 0 : index
    %c0_8 = arith.constant 0 : index
    %4 = vector.load %arg5[%c0_7, %c0_8] : memref<1x16xf32, #tpu.memory_space<vmem>>, vector<1x16xf32>
    %c0_9 = arith.constant 0 : index
    %c0_10 = arith.constant 0 : index
    %5 = vector.load %arg0[%c0_9, %c0_10] : memref<64x8xf32, #tpu.memory_space<vmem>>, vector<64x8xf32>
    %cst = arith.constant dense<0.000000e+00> : vector<64x32xf32>
    %6 = tpu.matmul %5, %1, %cst {dimension_numbers = #tpu.dot_dimension_numbers<[1], [0], [0], [1], [0, 0, 1, 1], [], []>} : vector<64x8xf32>, vector<8x32xf32>, vector<64x32xf32> -> vector<64x32xf32>
    %7 = vector.broadcast %3 : vector<1x32xf32> to vector<64x32xf32>
    %8 = arith.addf %6, %7 : vector<64x32xf32>
    %cst_11 = arith.constant 0.000000e+00 : f32
    %9 = vector.broadcast %cst_11 : f32 to vector<8x16xf32>
    %10 = vector.extract_strided_slice %8 {offsets = [0, 0], sizes = [8, 32], strides = [1, 1]} : vector<64x32xf32> to vector<8x32xf32>
    %cst_12 = arith.constant dense<0.000000e+00> : vector<8x16xf32>
    %11 = tpu.matmul %10, %2, %cst_12 {dimension_numbers = #tpu.dot_dimension_numbers<[1], [0], [0], [1], [0, 0, 1, 1], [], []>} : vector<8x32xf32>, vector<32x16xf32>, vector<8x16xf32> -> vector<8x16xf32>
    %12 = vector.broadcast %4 : vector<1x16xf32> to vector<8x16xf32>
    %13 = arith.addf %11, %12 : vector<8x16xf32>
    %14 = math.tanh %10 : vector<8x32xf32>
    %15 = vector.extract_strided_slice %8 {offsets = [8, 0], sizes = [8, 32], strides = [1, 1]} : vector<64x32xf32> to vector<8x32xf32>
    %cst_13 = arith.constant dense<0.000000e+00> : vector<8x32xf32>
    %16 = tpu.matmul %14, %0, %cst_13 {dimension_numbers = #tpu.dot_dimension_numbers<[1], [0], [0], [1], [0, 0, 1, 1], [], []>} : vector<8x32xf32>, vector<32x32xf32>, vector<8x32xf32> -> vector<8x32xf32>
    %17 = arith.addf %15, %16 : vector<8x32xf32>
    %cst_14 = arith.constant dense<0.000000e+00> : vector<8x16xf32>
    %18 = tpu.matmul %17, %2, %cst_14 {dimension_numbers = #tpu.dot_dimension_numbers<[1], [0], [0], [1], [0, 0, 1, 1], [], []>} : vector<8x32xf32>, vector<32x16xf32>, vector<8x16xf32> -> vector<8x16xf32>
    %19 = vector.broadcast %4 : vector<1x16xf32> to vector<8x16xf32>
    %20 = arith.addf %18, %19 : vector<8x16xf32>
    %21 = math.tanh %17 : vector<8x32xf32>
    %22 = vector.extract_strided_slice %8 {offsets = [16, 0], sizes = [8, 32], strides = [1, 1]} : vector<64x32xf32> to vector<8x32xf32>
    %cst_15 = arith.constant dense<0.000000e+00> : vector<8x32xf32>
    %23 = tpu.matmul %21, %0, %cst_15 {dimension_numbers = #tpu.dot_dimension_numbers<[1], [0], [0], [1], [0, 0, 1, 1], [], []>} : vector<8x32xf32>, vector<32x32xf32>, vector<8x32xf32> -> vector<8x32xf32>
    %24 = arith.addf %22, %23 : vector<8x32xf32>
    %cst_16 = arith.constant dense<0.000000e+00> : vector<8x16xf32>
    %25 = tpu.matmul %24, %2, %cst_16 {dimension_numbers = #tpu.dot_dimension_numbers<[1], [0], [0], [1], [0, 0, 1, 1], [], []>} : vector<8x32xf32>, vector<32x16xf32>, vector<8x16xf32> -> vector<8x16xf32>
    %26 = vector.broadcast %4 : vector<1x16xf32> to vector<8x16xf32>
    %27 = arith.addf %25, %26 : vector<8x16xf32>
    %28 = math.tanh %24 : vector<8x32xf32>
    %29 = vector.extract_strided_slice %8 {offsets = [24, 0], sizes = [8, 32], strides = [1, 1]} : vector<64x32xf32> to vector<8x32xf32>
    %cst_17 = arith.constant dense<0.000000e+00> : vector<8x32xf32>
    %30 = tpu.matmul %28, %0, %cst_17 {dimension_numbers = #tpu.dot_dimension_numbers<[1], [0], [0], [1], [0, 0, 1, 1], [], []>} : vector<8x32xf32>, vector<32x32xf32>, vector<8x32xf32> -> vector<8x32xf32>
    %31 = arith.addf %29, %30 : vector<8x32xf32>
    %cst_18 = arith.constant dense<0.000000e+00> : vector<8x16xf32>
    %32 = tpu.matmul %31, %2, %cst_18 {dimension_numbers = #tpu.dot_dimension_numbers<[1], [0], [0], [1], [0, 0, 1, 1], [], []>} : vector<8x32xf32>, vector<32x16xf32>, vector<8x16xf32> -> vector<8x16xf32>
    %33 = vector.broadcast %4 : vector<1x16xf32> to vector<8x16xf32>
    %34 = arith.addf %32, %33 : vector<8x16xf32>
    %35 = math.tanh %31 : vector<8x32xf32>
    %36 = vector.extract_strided_slice %8 {offsets = [32, 0], sizes = [8, 32], strides = [1, 1]} : vector<64x32xf32> to vector<8x32xf32>
    %cst_19 = arith.constant dense<0.000000e+00> : vector<8x32xf32>
    %37 = tpu.matmul %35, %0, %cst_19 {dimension_numbers = #tpu.dot_dimension_numbers<[1], [0], [0], [1], [0, 0, 1, 1], [], []>} : vector<8x32xf32>, vector<32x32xf32>, vector<8x32xf32> -> vector<8x32xf32>
    %38 = arith.addf %36, %37 : vector<8x32xf32>
    %cst_20 = arith.constant dense<0.000000e+00> : vector<8x16xf32>
    %39 = tpu.matmul %38, %2, %cst_20 {dimension_numbers = #tpu.dot_dimension_numbers<[1], [0], [0], [1], [0, 0, 1, 1], [], []>} : vector<8x32xf32>, vector<32x16xf32>, vector<8x16xf32> -> vector<8x16xf32>
    %40 = vector.broadcast %4 : vector<1x16xf32> to vector<8x16xf32>
    %41 = arith.addf %39, %40 : vector<8x16xf32>
    %42 = math.tanh %38 : vector<8x32xf32>
    %43 = vector.extract_strided_slice %8 {offsets = [40, 0], sizes = [8, 32], strides = [1, 1]} : vector<64x32xf32> to vector<8x32xf32>
    %cst_21 = arith.constant dense<0.000000e+00> : vector<8x32xf32>
    %44 = tpu.matmul %42, %0, %cst_21 {dimension_numbers = #tpu.dot_dimension_numbers<[1], [0], [0], [1], [0, 0, 1, 1], [], []>} : vector<8x32xf32>, vector<32x32xf32>, vector<8x32xf32> -> vector<8x32xf32>
    %45 = arith.addf %43, %44 : vector<8x32xf32>
    %cst_22 = arith.constant dense<0.000000e+00> : vector<8x16xf32>
    %46 = tpu.matmul %45, %2, %cst_22 {dimension_numbers = #tpu.dot_dimension_numbers<[1], [0], [0], [1], [0, 0, 1, 1], [], []>} : vector<8x32xf32>, vector<32x16xf32>, vector<8x16xf32> -> vector<8x16xf32>
    %47 = vector.broadcast %4 : vector<1x16xf32> to vector<8x16xf32>
    %48 = arith.addf %46, %47 : vector<8x16xf32>
    %49 = math.tanh %45 : vector<8x32xf32>
    %50 = vector.extract_strided_slice %8 {offsets = [48, 0], sizes = [8, 32], strides = [1, 1]} : vector<64x32xf32> to vector<8x32xf32>
    %cst_23 = arith.constant dense<0.000000e+00> : vector<8x32xf32>
    %51 = tpu.matmul %49, %0, %cst_23 {dimension_numbers = #tpu.dot_dimension_numbers<[1], [0], [0], [1], [0, 0, 1, 1], [], []>} : vector<8x32xf32>, vector<32x32xf32>, vector<8x32xf32> -> vector<8x32xf32>
    %52 = arith.addf %50, %51 : vector<8x32xf32>
    %cst_24 = arith.constant dense<0.000000e+00> : vector<8x16xf32>
    %53 = tpu.matmul %52, %2, %cst_24 {dimension_numbers = #tpu.dot_dimension_numbers<[1], [0], [0], [1], [0, 0, 1, 1], [], []>} : vector<8x32xf32>, vector<32x16xf32>, vector<8x16xf32> -> vector<8x16xf32>
    %54 = vector.broadcast %4 : vector<1x16xf32> to vector<8x16xf32>
    %55 = arith.addf %53, %54 : vector<8x16xf32>
    %56 = math.tanh %52 : vector<8x32xf32>
    %57 = vector.extract_strided_slice %8 {offsets = [56, 0], sizes = [8, 32], strides = [1, 1]} : vector<64x32xf32> to vector<8x32xf32>
    %cst_25 = arith.constant dense<0.000000e+00> : vector<8x32xf32>
    %58 = tpu.matmul %56, %0, %cst_25 {dimension_numbers = #tpu.dot_dimension_numbers<[1], [0], [0], [1], [0, 0, 1, 1], [], []>} : vector<8x32xf32>, vector<32x32xf32>, vector<8x32xf32> -> vector<8x32xf32>
    %59 = arith.addf %57, %58 : vector<8x32xf32>
    %cst_26 = arith.constant dense<0.000000e+00> : vector<8x16xf32>
    %60 = tpu.matmul %59, %2, %cst_26 {dimension_numbers = #tpu.dot_dimension_numbers<[1], [0], [0], [1], [0, 0, 1, 1], [], []>} : vector<8x32xf32>, vector<32x16xf32>, vector<8x16xf32> -> vector<8x16xf32>
    %61 = vector.broadcast %4 : vector<1x16xf32> to vector<8x16xf32>
    %62 = arith.addf %60, %61 : vector<8x16xf32>
    %63 = tpu.concatenate %9, %13, %20, %27, %34, %41, %48, %55, %62 in 1 : vector<8x16xf32>, vector<8x16xf32>, vector<8x16xf32>, vector<8x16xf32>, vector<8x16xf32>, vector<8x16xf32>, vector<8x16xf32>, vector<8x16xf32>, vector<8x16xf32> -> vector<8x144xf32>
    %64 = vector.extract_strided_slice %63 {offsets = [0, 0], sizes = [2, 144], strides = [1, 1]} : vector<8x144xf32> to vector<2x144xf32>
    %c0_27 = arith.constant 0 : index
    %c0_28 = arith.constant 0 : index
    %65 = vector.load %arg6[%c0_27, %c0_28] : memref<2x144xf32, #tpu.memory_space<vmem>>, vector<2x144xf32>
    tpu.vector_store %arg6[%c0_27, %c0_28], %64 {strides = array<i32>} : memref<2x144xf32, #tpu.memory_space<vmem>>, vector<2x144xf32>,
    return
  }
}

</mosaic_0001>

<bundles_post_ra>
// kernel: tpu_custom_call.1
= control target key start
LH: loop header
LB: loop body
LE: loop exit
PB: predicated region body
PF: predicated region fallthrough
CT: control target
= control target key end

     0   :  { %vm49_vm0 = vcmask 64512   ;;  %s2060_s0 = inlined_call_operand.vmem [shape: f32[64,8], index: 0, kind: input, shape index: {}]   ;;  %s2061_s1 = inlined_call_operand.vmem [shape: f32[32,32], index: 1, kind: input, shape index: {}]   ;;  %s2062_s2 = inlined_call_operand.vmem [shape: f32[1,32], index: 2, kind: input, shape index: {}]   ;;  %s2063_s3 = inlined_call_operand.vmem [shape: f32[8,32], index: 3, kind: input, shape index: {}]   ;;  %s2064_s4 = inlined_call_operand.vmem [shape: f32[32,16], index: 4, kind: input, shape index: {}]   ;;  %s2065_s5 = inlined_call_operand.vmem [shape: f32[1,16], index: 5, kind: input, shape index: {}]   ;;  %s2066_s6 = inlined_call_operand.hbm [shape: f32[2,144], index: 6, kind: output, shape index: {}]  }
   0x1   :  { %v28_v0 = vld [vmem:[%s2063_s3] sm:$0xff]  ;;  %v36_v2 = vld [vmem:[%s2060_s0 + $0x8] sm:$0xff] }
   0x2   :  { %v35_v1 = vld [vmem:[%s2060_s0] sm:$0xff]  ;;  %1474 = vmatprep.subr.mxu0 %v28_v0  ;;  %v30_v4 = vld [vmem:[%s2064_s4 + $0x8] sm:$0xff] }
   0x3   :  { %1476 = vmatprep.mubr.msk.f32.mxu0 %vm49_vm0, %v35_v1  ;;  %v29_v3 = vld [vmem:[%s2064_s4] sm:$0xff] }
   0x4   :  { %11 = vsyncpa [#allocation3], 0  ;;  %1475 = vmatpush3.msra.mxu0 %v28_v0  ;;  %v1793_v5 = vmov 0.0|0.0   ;;  %v1857_v6 = vpack.c.bf16 %v30_v4, %v29_v3  ;;  %v31_v7 = vld [vmem:[%s2064_s4 + $0x10] sm:$0xff]  ;;  %v32_v8 = vld [vmem:[%s2064_s4 + $0x18] sm:$0xff]  ;;  %vm1794_vm1 = vmmov 0  }
   0x5   :  { %1653 = vmatprep.subr.bf16.mxu1 %v1793_v5  ;;  %1477 = vmatmul.mubr.msk.f32.vlgmr.msra.gmra.mrb[0].mxu0 %vm49_vm0, %v36_v2  ;;  %v1871_v9 = vpack.c.bf16 %v32_v8, %v31_v7  ;;  %v1795_v10 = vmov 0.0   ;;  %v24_v11 = vld [vmem:[%s2061_s1] sm:$0xff]  ;;  %v25_v12 = vld [vmem:[%s2061_s1 + $0x8] sm:$0xff]  ;;  %vm185_vm2 = vcmask 261120   ;;  %v26_v18 = vld [vmem:[%s2061_s1 + $0x10] sm:$0xff]  ;;  %s1796_s3 = smov 16  }
   0x6   :  { %1665 = vmatprep.subr.bf16.mxu0 %v1793_v5  ;;  %1655 = vmatpush3.bf16.msra.mxu1 %v1857_v6  ;;  %v1888_v13 = vld [vmem:[%s2062_s2] ss:$0 sm:$0xff]  ;;  %v1890_v16 = vpack.c.bf16 %v25_v12, %v24_v11  ;;  %v27_v19 = vld [vmem:[%s2061_s1 + $0x18] sm:$0xff]  ;;  %v37_v22 = vld [vmem:[%s2060_s0 + $0x10] sm:$0xff]  ;;  %s1799_s7 = smov 64   ;;  %s1800_s8 = smov 80  }
   0x7   :  { %1667 = vmatpush3.bf16.msra.mxu0 %v1857_v6  ;;  %1656 = vmatprep.subr.bf16.mxu1 %v1793_v5  ;;  %v1901_v20 = vpack.c.bf16 %v27_v19, %v26_v18  ;;  %v38_v23 = vld [vmem:[%s2060_s0 + $0x18] sm:$0xff]  ;;  %v39_v24 = vld [vmem:[%s2060_s0 + $0x20] sm:$0xff]  ;;  %v40_v25 = vld [vmem:[%s2060_s0 + $0x28] sm:$0xff]  ;;  %s1801_s9 = smov 96   ;;  %s1802_s10 = smov 112   ;;  %vm1323_vm3 = vcmask 130048  }
   0x8   :  { %1668 = vmatprep.subr.bf16.mxu0 %v1793_v5  ;;  %1496 = vmatprep.mubr.msk.f32.mxu1 %vm1794_vm1, %v1795_v10  ;;  %v41_v26 = vld [vmem:[%s2060_s0 + $0x30] sm:$0xff]  ;;  %v42_v27 = vld [vmem:[%s2060_s0 + $0x38] sm:$0xff]  ;;  %v1944_v28 = vld [vmem:[%s2065_s5] ss:$0 sm:$0xff]  ;;  %s1797_s0 = smov 32   ;;  %s1798_s5 = smov 48  }
   0x9   :  { %1479 = vmatprep.mubr.msk.f32.mxu0 %vm49_vm0, %v37_v22  ;;  %vm1326_vm4 = vcmask 392192   ;;  %vm1328_vm5 = vcmask 523264   ;;  %vm1330_vm6 = vcmask 654336   ;;  %vm1332_vm7 = vcmask 785408   ;;  %s1804_s11 = smov [#allocation2]  }
   0xa   :  { %1658 = vmatpush3.bf16.msra.mxu1 %v1871_v9  ;;  %1480 = vmatmul.mubr.msk.f32.gmra.mrb[2].mxu0 %vm49_vm0, %v38_v23  ;;  %vm1334_vm8 = vcmask 916480   ;;  %vm1347_vm9 = vcmask 1041408   ;;  %vm1348_vm10 = vcmask 125954   ;;  %s1357_s4 = sshll.u32 %s1804_s11, 4  ;;  %s1358_s4 = int_to_ptr.vmem [resolvable:$true] %s1357_s4 }
   0xb   :  { %1670 = vmatpush3.bf16.msra.mxu0 %v1871_v9  ;;  %1659 = vmatprep.subr.bf16.mxu1 %v1793_v5  ;;  %vm1349_vm11 = vmor %vm1348_vm10, %vm1347_vm9  ;;  %s1769_s12 = scalar_lea.vmem %s1358_s4, 64  ;;  %p1774_p1 = scmp.lt.s32.totalorder %s1358_s4, %s1358_s4 }
   0xc   :  { %1677 = vmatprep.subr.bf16.mxu0 %v1793_v5  ;;  %1482 = vmatprep.mubr.msk.f32.mxu0 %vm49_vm0, %v39_v24  ;;  %p1770_p0 = scmp.ne.s32.totalorder %s1358_s4, %s1769_s12  ;;  %p1775_p2 = scmp.lt.s32.totalorder %s1769_s12, %s1769_s12 }
   0xe   :  { %1483 = vmatmul.mubr.msk.f32.gmra.mrb[4].mxu0 %vm49_vm0, %v40_v25  ;;  %p1776_p3 = por %p1775_p2, %p1774_p1 }
   0xf   :  { %1485 = vmatprep.mubr.msk.f32.mxu0 %vm49_vm0, %v41_v26 }
  0x10   :  { %p1777_p4 = pnand %p1776_p3, %p1770_p0 }
  0x12   :  { %1486 = vmatmul.mubr.msk.f32.gmra.mrb[6].mxu0 %vm49_vm0, %v42_v27 }
  0x13   :  { %1518 = vmatprep.mubr.msk.f32.mxu0 %vm1794_vm1, %v1795_v10 }
  0xd8   :  { %v1478_v14 = vpop.f32.mrb[0].mxu0 }
  0xd9   :  { %v140_v15 = vpop.f32.mrb[1].mxu0  ;;  %v146_v32 = vadd.f32 %v1478_v14, %v1888_v13 }
  0xda   :  { %v141_v17 = vadd.f32 %v1888_v13, %v140_v15 }
  0xdc   :  { %1755 = vtanh.f32 %v141_v17  ;;  %1497 = vmatmul.mubr.msk.f32.vlgmr.msra.gmra.mrb[0].mxu1 %vm185_vm2, %v141_v17 }
  0xdd   :  { %1661 = vmatpush3.bf16.msra.mxu1 %v1890_v16  ;;  %1507 = vmatprep.mubr.msk.f32.mxu1 %vm1794_vm1, %v1795_v10  ;;  %v1481_v37 = vpop.f32.mrb[2].mxu0 }
  0xde   :  { %1662 = vmatprep.subr.bf16.mxu1 %v1793_v5  ;;  %v150_v38 = vpop.f32.mrb[3].mxu0  ;;  %v156_v54 = vadd.f32 %v1481_v37, %v1888_v13 }
  0xdf   :  { %v151_v46 = vadd.f32 %v1888_v13, %v150_v38 }
  0xe1   :  { %1664 = vmatpush3.bf16.msra.mxu1 %v1901_v20  ;;  %v1962_v39 = vpop.f32.mrb[4].mxu0 }
  0xe2   :  { %1671 = vmatprep.subr.bf16.mxu1 %v1793_v5  ;;  %v160_v40 = vpop.f32.mrb[5].mxu0  ;;  %v166_v8 = vadd.f32 %v1962_v39, %v1888_v13 }
  0xe3   :  { %v161_v62 = vadd.f32 %v1888_v13, %v160_v40 }
  0xe5   :  { %v1964_v41 = vpop.f32.mrb[6].mxu0 }
  0xe6   :  { %v1756_v21 = vpop.eup %1755  ;;  %v1966_v42 = vpop.f32.mrb[7].mxu0  ;;  %v176_v27 = vadd.f32 %v1964_v41, %v1888_v13 }
  0xe7   :  { %1508 = vmatmul.mubr.msk.f32.vlgmr.msra.gmra.mrb[2].mxu1 %vm185_vm2, %v1756_v21  ;;  %v171_v21 = vadd.f32 %v1888_v13, %v1966_v42 }
  0xe8   :  { %1673 = vmatpush3.bf16.msra.mxu1 %v1890_v16  ;;  %1529 = vmatprep.mubr.msk.f32.mxu1 %vm1794_vm1, %v1795_v10 }
  0xe9   :  { %1674 = vmatprep.subr.bf16.mxu1 %v1793_v5 }
  0xec   :  { %1676 = vmatpush3.bf16.msra.mxu1 %v1901_v20 }
  0xed   :  { %1683 = vmatprep.subr.bf16.mxu1 %v1793_v5 }
 0x1af   :  { %v255_v29 = vpop.f32.mrb[0].mxu1 }
 0x1b0   :  { %v256_v30 = vadd.f32 %v1944_v28, %v255_v29  ;;  %v1498_v31 = vpop.f32.mrb[1].mxu1 }
 0x1b2   :  { %1296 = vrot.lane.b32.xlu0 %v256_v30, %s1796_s3 }
 0x1ba   :  { %v329_v33 = vpop.f32.mrb[2].mxu1 }
 0x1bb   :  { %v333_v34 = vadd.f32 %v329_v33, %v146_v32  ;;  %v1509_v35 = vpop.f32.mrb[3].mxu1  ;;  %v1803_v32 = vmov 1983009808  }
 0x1bc   :  { %v1340_v33 = vunpack.c.l.s4 %v1803_v32 }
 0x1bd   :  { %1757 = vtanh.f32 %v333_v34  ;;  %1519 = vmatmul.mubr.msk.f32.vlgmr.msra.gmra.mrb[8].mxu0 %vm185_vm2, %v333_v34  ;;  %v1342_v34 = vlaneseq }
 0x1be   :  { %1679 = vmatpush3.bf16.msra.mxu0 %v1857_v6  ;;  %1540 = vmatprep.mubr.msk.f32.mxu0 %vm1794_vm1, %v1795_v10  ;;  %v1341_v39 = vunpack.c.0.s8 %v1340_v33 }
 0x1bf   :  { %1680 = vmatprep.subr.bf16.mxu0 %v1793_v5  ;;  %v1343_v40 = vshrl.u32 %v1342_v34, 7 }
 0x1c2   :  { %1682 = vmatpush3.bf16.msra.mxu0 %v1871_v9 }
 0x1c3   :  { %1689 = vmatprep.subr.bf16.mxu0 %v1793_v5 }
 0x1c7   :  { %v1758_v36 = vpop.eup %1757 }
 0x1c8   :  { %1530 = vmatmul.mubr.msk.f32.vlgmr.msra.gmra.mrb[4].mxu1 %vm185_vm2, %v1758_v36 }
 0x1c9   :  { %1685 = vmatpush3.bf16.msra.mxu1 %v1890_v16  ;;  %1551 = vmatprep.mubr.msk.f32.mxu1 %vm1794_vm1, %v1795_v10 }
 0x1ca   :  { %1686 = vmatprep.subr.bf16.mxu1 %v1793_v5 }
 0x1cd   :  { %1688 = vmatpush3.bf16.msra.mxu1 %v1901_v20 }
 0x1ce   :  { %1695 = vmatprep.subr.bf16.mxu1 %v1793_v5 }
 0x290   :  { %v403_v43 = vpop.f32.mrb[8].mxu0 }
 0x291   :  { %v404_v44 = vadd.f32 %v1944_v28, %v403_v43  ;;  %v1520_v45 = vpop.f32.mrb[9].mxu0 }
 0x293   :  { %1300 = vrot.lane.b32.xlu0 %v404_v44, %s1797_s0 }
 0x29b   :  { %v477_v47 = vpop.f32.mrb[4].mxu1 }
 0x29c   :  { %v481_v48 = vadd.f32 %v477_v47, %v151_v46  ;;  %v1531_v49 = vpop.f32.mrb[5].mxu1 }
 0x29e   :  { %1759 = vtanh.f32 %v481_v48  ;;  %1541 = vmatmul.mubr.msk.f32.vlgmr.msra.gmra.mrb[10].mxu0 %vm185_vm2, %v481_v48  ;;  %v1344_v48 = vsub.s32 %v1341_v39, %v1343_v40 }
 0x29f   :  { %1691 = vmatpush3.bf16.msra.mxu0 %v1857_v6  ;;  %1562 = vmatprep.mubr.msk.f32.mxu0 %vm1794_vm1, %v1795_v10 }
 0x2a0   :  { %1692 = vmatprep.subr.bf16.mxu0 %v1793_v5 }
 0x2a3   :  { %1694 = vmatpush3.bf16.msra.mxu0 %v1871_v9 }
 0x2a4   :  { %1701 = vmatprep.subr.bf16.mxu0 %v1793_v5 }
 0x2a8   :  { %v1760_v50 = vpop.eup %1759 }
 0x2a9   :  { %1552 = vmatmul.mubr.msk.f32.vlgmr.msra.gmra.mrb[6].mxu1 %vm185_vm2, %v1760_v50 }
 0x2aa   :  { %1697 = vmatpush3.bf16.msra.mxu1 %v1890_v16  ;;  %1573 = vmatprep.mubr.msk.f32.mxu1 %vm1794_vm1, %v1795_v10 }
 0x2ab   :  { %1698 = vmatprep.subr.bf16.mxu1 %v1793_v5 }
 0x2ae   :  { %1700 = vmatpush3.bf16.msra.mxu1 %v1901_v20 }
 0x2af   :  { %1707 = vmatprep.subr.bf16.mxu1 %v1793_v5 }
 0x371   :  { %v551_v51 = vpop.f32.mrb[10].mxu0 }
 0x372   :  { %v552_v52 = vadd.f32 %v1944_v28, %v551_v51  ;;  %v1542_v53 = vpop.f32.mrb[11].mxu0 }
 0x374   :  { %1304 = vrot.lane.b32.xlu1 %v552_v52, %s1798_s5 }
 0x37c   :  { %v625_v55 = vpop.f32.mrb[6].mxu1 }
 0x37d   :  { %v629_v56 = vadd.f32 %v625_v55, %v156_v54  ;;  %v1553_v57 = vpop.f32.mrb[7].mxu1 }
 0x37f   :  { %1761 = vtanh.f32 %v629_v56  ;;  %1563 = vmatmul.mubr.msk.f32.vlgmr.msra.gmra.mrb[12].mxu0 %vm185_vm2, %v629_v56 }
 0x380   :  { %1703 = vmatpush3.bf16.msra.mxu0 %v1857_v6  ;;  %1584 = vmatprep.mubr.msk.f32.mxu0 %vm1794_vm1, %v1795_v10 }
 0x381   :  { %1704 = vmatprep.subr.bf16.mxu0 %v1793_v5 }
 0x384   :  { %1706 = vmatpush3.bf16.msra.mxu0 %v1871_v9 }
 0x385   :  { %1713 = vmatprep.subr.bf16.mxu0 %v1793_v5 }
 0x389   :  { %v1762_v58 = vpop.eup %1761 }
 0x38a   :  { %1574 = vmatmul.mubr.msk.f32.vlgmr.msra.gmra.mrb[8].mxu1 %vm185_vm2, %v1762_v58 }
 0x38b   :  { %1709 = vmatpush3.bf16.msra.mxu1 %v1890_v16  ;;  %1595 = vmatprep.mubr.msk.f32.mxu1 %vm1794_vm1, %v1795_v10 }
 0x38c   :  { %1710 = vmatprep.subr.bf16.mxu1 %v1793_v5 }
 0x38f   :  { %1712 = vmatpush3.bf16.msra.mxu1 %v1901_v20 }
 0x390   :  { %1719 = vmatprep.subr.bf16.mxu1 %v1793_v5 }
 0x452   :  { %v699_v59 = vpop.f32.mrb[12].mxu0 }
 0x453   :  { %v700_v60 = vadd.f32 %v1944_v28, %v699_v59  ;;  %v1564_v61 = vpop.f32.mrb[13].mxu0 }
 0x455   :  { %1308 = vrot.lane.b32.xlu1 %v700_v60, %s1799_s7 }
 0x45d   :  { %v773_v63 = vpop.f32.mrb[8].mxu1 }
 0x45e   :  { %v777_v0 = vadd.f32 %v773_v63, %v161_v62  ;;  %v1575_v1 = vpop.f32.mrb[9].mxu1 }
 0x460   :  { %1763 = vtanh.f32 %v777_v0  ;;  %1585 = vmatmul.mubr.msk.f32.vlgmr.msra.gmra.mrb[14].mxu0 %vm185_vm2, %v777_v0 }
 0x461   :  { %1715 = vmatpush3.bf16.msra.mxu0 %v1857_v6  ;;  %1606 = vmatprep.mubr.msk.f32.mxu0 %vm1794_vm1, %v1795_v10 }
 0x462   :  { %1716 = vmatprep.subr.bf16.mxu0 %v1793_v5 }
 0x465   :  { %1718 = vmatpush3.bf16.msra.mxu0 %v1871_v9 }
 0x466   :  { %1725 = vmatprep.subr.bf16.mxu0 %v1793_v5 }
 0x46a   :  { %v1764_v2 = vpop.eup %1763 }
 0x46b   :  { %1596 = vmatmul.mubr.msk.f32.vlgmr.msra.gmra.mrb[10].mxu1 %vm185_vm2, %v1764_v2 }
 0x46c   :  { %1721 = vmatpush3.bf16.msra.mxu1 %v1890_v16  ;;  %1617 = vmatprep.mubr.msk.f32.mxu1 %vm1794_vm1, %v1795_v10 }
 0x46d   :  { %1722 = vmatprep.subr.bf16.mxu1 %v1793_v5 }
 0x470   :  { %1724 = vmatpush3.bf16.msra.mxu1 %v1901_v20 }
 0x471   :  { %1731 = vmatprep.subr.bf16.mxu1 %v1793_v5 }
 0x533   :  { %v847_v3 = vpop.f32.mrb[14].mxu0 }
 0x534   :  { %v848_v4 = vadd.f32 %v1944_v28, %v847_v3  ;;  %v1586_v7 = vpop.f32.mrb[15].mxu0 }
 0x536   :  { %1312 = vrot.lane.b32.xlu0 %v848_v4, %s1800_s8 }
 0x53e   :  { %v921_v11 = vpop.f32.mrb[10].mxu1 }
 0x53f   :  { %v925_v12 = vadd.f32 %v921_v11, %v166_v8  ;;  %v1597_v14 = vpop.f32.mrb[11].mxu1 }
 0x541   :  { %1765 = vtanh.f32 %v925_v12  ;;  %1607 = vmatmul.mubr.msk.f32.vlgmr.msra.gmra.mrb[16].mxu0 %vm185_vm2, %v925_v12 }
 0x542   :  { %1727 = vmatpush3.bf16.msra.mxu0 %v1857_v6  ;;  %1628 = vmatprep.mubr.msk.f32.mxu0 %vm1794_vm1, %v1795_v10 }
 0x543   :  { %1728 = vmatprep.subr.bf16.mxu0 %v1793_v5 }
 0x546   :  { %1730 = vmatpush3.bf16.msra.mxu0 %v1871_v9 }
 0x547   :  { %1737 = vmatprep.subr.bf16.mxu0 %v1793_v5 }
 0x54b   :  { %v1766_v15 = vpop.eup %1765 }
 0x54c   :  { %1618 = vmatmul.mubr.msk.f32.vlgmr.msra.gmra.mrb[12].mxu1 %vm185_vm2, %v1766_v15 }
 0x54d   :  { %1733 = vmatpush3.bf16.msra.mxu1 %v1890_v16  ;;  %1639 = vmatprep.mubr.msk.f32.mxu1 %vm1794_vm1, %v1795_v10 }
 0x54e   :  { %1734 = vmatprep.subr.bf16.mxu1 %v1793_v5 }
 0x551   :  { %1736 = vmatpush3.bf16.msra.mxu1 %v1901_v20 }
 0x614   :  { %v995_v17 = vpop.f32.mrb[16].mxu0 }
 0x615   :  { %v996_v18 = vadd.f32 %v1944_v28, %v995_v17  ;;  %v1608_v19 = vpop.f32.mrb[17].mxu0 }
 0x617   :  { %1316 = vrot.lane.b32.xlu1 %v996_v18, %s1801_s9 }
 0x61f   :  { %v1069_v22 = vpop.f32.mrb[12].mxu1 }
 0x620   :  { %v1073_v23 = vadd.f32 %v1069_v22, %v171_v21  ;;  %v1619_v24 = vpop.f32.mrb[13].mxu1 }
 0x622   :  { %1767 = vtanh.f32 %v1073_v23  ;;  %1629 = vmatmul.mubr.msk.f32.vlgmr.msra.gmra.mrb[18].mxu0 %vm185_vm2, %v1073_v23 }
 0x623   :  { %1739 = vmatpush3.bf16.msra.mxu0 %v1857_v6  ;;  %1650 = vmatprep.mubr.msk.f32.mxu0 %vm1794_vm1, %v1795_v10  ;;  %v1305_v10 = vpop.permute.xlu1 %1304 }
 0x624   :  { %1740 = vmatprep.subr.bf16.mxu0 %v1793_v5  ;;  %v1297_v5 = vpop.permute.xlu0 %1296 }
 0x625   :  { %v1324_v35 = vsel %vm1323_vm3, 0.0, %v1297_v5 }
 0x627   :  { %1742 = vmatpush3.bf16.msra.mxu0 %v1871_v9  ;;  %v1309_v31 = vpop.permute.xlu1 %1308 }
 0x628   :  { %v1301_v9 = vpop.permute.xlu0 %1300 }
 0x629   :  { %v1325_v37 = vsel %vm185_vm2, %v1324_v35, %v1301_v9 }
 0x62a   :  { %v1327_v13 = vsel %vm1326_vm4, %v1325_v37, %v1305_v10 }
 0x62b   :  { %v1329_v41 = vsel %vm1328_vm5, %v1327_v13, %v1309_v31 }
 0x62c   :  { %v1768_v16 = vpop.eup %1767  ;;  %v1313_v36 = vpop.permute.xlu0 %1312 }
 0x62d   :  { %1640 = vmatmul.mubr.msk.f32.vlgmr.msra.gmra.mrb[14].mxu1 %vm185_vm2, %v1768_v16  ;;  %v1331_v42 = vsel %vm1330_vm6, %v1329_v41, %v1313_v36 }
 0x689   :  { %v1317_v38 = vpop.permute.xlu1 %1316 }
 0x68a   :  { %v1333_v44 = vsel %vm1332_vm7, %v1331_v42, %v1317_v38 }
 0x6f5   :  { %v1143_v20 = vpop.f32.mrb[18].mxu0 }
 0x6f6   :  { %v1144_v25 = vadd.f32 %v1944_v28, %v1143_v20  ;;  %v1630_v26 = vpop.f32.mrb[19].mxu0 }
 0x6f8   :  { %1320 = vrot.lane.b32.xlu0 %v1144_v25, %s1802_s10 }
 0x700   :  { %v1217_v6 = vpop.f32.mrb[14].mxu1 }
 0x701   :  { %v1221_v29 = vadd.f32 %v1217_v6, %v176_v27  ;;  %v1641_v30 = vpop.f32.mrb[15].mxu1 }
 0x703   :  { %1651 = vmatmul.mubr.msk.f32.vlgmr.msra.gmra.mrb[20].mxu0 %vm185_vm2, %v1221_v29 }
 0x76a   :  { %v1321_v43 = vpop.permute.xlu0 %1320 }
 0x76b   :  { %v1335_v49 = vsel %vm1334_vm8, %v1333_v44, %v1321_v43 }
 0x7d6   :  { %v1291_v45 = vpop.f32.mrb[20].mxu0 }
 0x7d7   :  { %v1292_v46 = vadd.f32 %v1944_v28, %v1291_v45  ;;  %v1652_v47 = vpop.f32.mrb[21].mxu0 }
 0x7d9   :  { %v1338_v50 = vcombine.low %v1335_v49, %v1292_v46 }
 0x7db   :  { %v1345_v51 = vrot.slane %v1338_v50, %v1344_v48 }
 0x7dd   :  { %1350 = vst.msk [vmem:[#allocation2] sm:$0xf] %vm1349_vm11, %v1345_v51 }
 0x7de   :  { %1780 = shalt.err (!%p1777_p4)
}
 0x7df   :  { %s1781_s15 = scalar_lea.hbm %s2066_s6, 64 }
 0x7e0   :  { %p1782_p5 = scmp.ne.s32.totalorder %s2066_s6, %s1781_s15  ;;  %p1785_p6 = scmp.lt.u32.totalorder %s1781_s15, %s2066_s6 }
 0x7e2   :  { %p1787_p7 = pnand %p1785_p6, %p1782_p5 }
 0x7e4   :  { %1790 = shalt.err (!%p1787_p7)
}
 0x7e5   :  { %1360 = dma.vmem_to_hbm [thread:$0]  %s1358_s4, 64, %s2066_s6, [#allocation3]  }
 0x7e6   :  { %1791 = dma.done.wait [#allocation3], 64  }
 0x7e7   :  { %1792 = vsyncadd [#allocation3], 4294967232 }
 0x7e8   :  { %1364 = vsyncpa [#allocation3], 1 }

</bundles_post_ra>
